<compile_context>
chip_gen: v5e
topology: v5e:2x2
jax: 0.10.0
libtpu: 0.0.40
codegen_flags: <defaults>
</compile_context>

<pallas_src>
import functools

import jax
import jax.numpy as jnp
from jax.experimental import pallas as pl
from jax.experimental.pallas import tpu as pltpu


# ~4-6 MiB input tiles amortize the ~0.35 us per-grid-step overhead to <10% of the
# tile DMA on v5e/v6e (and most of it on v7x) while staying well under the raised
# scoped-VMEM limit below with double-buffering + in-kernel temporaries on every
# generation (v7x has only 64 MiB physical VMEM).
_LANE_TILE_BYTES = 6 * 1024 * 1024
_PACKED_TILE_BYTES = 4 * 1024 * 1024
_VMEM_LIMIT_BYTES = 48 * 1024 * 1024


def _round_up(x, m):
    return ((x + m - 1) // m) * m


def _sublane_multiple(dtype):
    # f32 -> 8, bf16 -> 16, int8/fp8 -> 32 (sub-32-bit dtypes pack along sublanes).
    return max(8, 32 // jnp.dtype(dtype).itemsize)


def _pick_tile_rows(rows, row_bytes, target_bytes, sub):
    """Row-block size: ~target_bytes per input tile, a multiple of `sub`, and
    at least 2 grid steps when there is enough work (v7x megacore)."""
    tile_r = max(sub, target_bytes // max(row_bytes, 1))
    if rows >= 2 * sub:
        tile_r = min(tile_r, _round_up(pl.cdiv(rows, 2), sub))
    tile_r = max(sub, (tile_r // sub) * sub)
    return min(tile_r, _round_up(rows, sub))


# ---------------------------------------------------------------------------
# General path: reduce along the lane (last) axis of a (tile_r, n) tile.
# Numerically stable two-pass formula, f32 accumulation.
# ---------------------------------------------------------------------------
def _std_lane_kernel(x_ref, o_ref, *, n):
    x = x_ref[...].astype(jnp.float32)
    mean = jnp.sum(x, axis=-1, keepdims=True) * (1.0 / n)
    diff = x - mean
    var = jnp.sum(diff * diff, axis=-1, keepdims=True) * (1.0 / (n - 1))
    o_ref[...] = jnp.sqrt(var).astype(o_ref.dtype)


def _std_lane(x2d, rows, n, out_dtype):
    itemsize = x2d.dtype.itemsize
    sub = _sublane_multiple(x2d.dtype)
    tile_r = _pick_tile_rows(rows, n * itemsize, _LANE_TILE_BYTES, sub)
    grid = pl.cdiv(rows, tile_r)  # partial last block instead of a jnp.pad copy
    return pl.pallas_call(
        functools.partial(_std_lane_kernel, n=n),
        out_shape=jax.ShapeDtypeStruct((rows, 1), out_dtype),
        grid=(grid,),
        in_specs=[pl.BlockSpec((tile_r, n), lambda i: (i, 0))],
        out_specs=pl.BlockSpec((tile_r, 1), lambda i: (i, 0)),
        compiler_params=pltpu.CompilerParams(
            dimension_semantics=("parallel",),
            vmem_limit_bytes=_VMEM_LIMIT_BYTES),
        cost_estimate=pl.CostEstimate(
            flops=int(3 * rows * n),
            transcendentals=int(rows),
            bytes_accessed=int(rows * n * itemsize + rows * itemsize)),
    )(x2d)


# ---------------------------------------------------------------------------
# Small-n path: g = 128 // n original rows ("segments") packed into each
# 128-lane row via a pure reshape (no HBM transpose).
#   * mean: log2(n)-step masked butterfly (pltpu.roll + select/add), exact f32,
#     per-segment sum broadcast for free.
#   * variance: one exact-f32 HIGHEST dot against a resident 0/1 segment matrix,
#     which sums the squared deviations per segment AND compacts to (tile_r, g).
# ---------------------------------------------------------------------------
def _std_packed_kernel(x_ref, smat_ref, o_ref, *, n):
    x = x_ref[...].astype(jnp.float32)                       # (tile_r, 128)
    lane = jax.lax.broadcasted_iota(jnp.int32, (1, 128), 1)  # 0..127 (one vreg)

    # Roll-direction probe: makes the butterfly correct under either rotate
    # convention of pltpu.roll (costs one 1x128 roll + compare per grid step).
    probe = pltpu.roll(lane, shift=1, axis=1)
    np_conv = probe == jnp.where(lane == 0, 127, lane - 1)   # all-true / all-false

    # Within-segment all-reduce: each lane ends up holding its n-lane segment sum.
    ssum = x
    s = 1
    while s < n:
        up = pltpu.roll(ssum, shift=128 - s, axis=1)  # np-conv: lane i <- lane i+s
        dn = pltpu.roll(ssum, shift=s, axis=1)        # np-conv: lane i <- lane i-s
        take_up = ((lane & s) == 0) == np_conv
        ssum = ssum + jnp.where(take_up, up, dn)
        s *= 2

    mean = ssum * (1.0 / n)                           # per-segment mean, replicated
    diff = x - mean
    sq = diff * diff

    # Only remaining MXU use: per-segment sum of squared deviations + compaction
    # to (tile_r, g).  HIGHEST keeps the f32 data exact (do NOT drop to DEFAULT).
    var = jnp.dot(sq, smat_ref[...], precision=jax.lax.Precision.HIGHEST,
                  preferred_element_type=jnp.float32) * (1.0 / (n - 1))
    o_ref[...] = jnp.sqrt(var).astype(o_ref.dtype)


def _std_packed(x2d, rows, n, out_dtype):
    g = 128 // n
    prows = rows // g                      # caller guarantees rows % g == 0
    xp = x2d.reshape(prows, 128)           # pure reshape: no HBM copy / transpose
    itemsize = x2d.dtype.itemsize
    sub = _sublane_multiple(x2d.dtype)
    tile_r = _pick_tile_rows(prows, 128 * itemsize, _PACKED_TILE_BYTES, sub)
    grid = pl.cdiv(prows, tile_r)          # partial last block instead of jnp.pad

    # 0/1 segment matrix, hoisted out of the kernel and kept resident
    # (constant index_map) instead of being rebuilt via iota every grid step.
    lane_idx = jnp.arange(128, dtype=jnp.int32).reshape(128, 1)
    seg_idx = jnp.arange(g, dtype=jnp.int32).reshape(1, g)
    s_mat = (lane_idx // n == seg_idx).astype(jnp.float32)

    out = pl.pallas_call(
        functools.partial(_std_packed_kernel, n=n),
        out_shape=jax.ShapeDtypeStruct((prows, g), out_dtype),
        grid=(grid,),
        in_specs=[pl.BlockSpec((tile_r, 128), lambda i: (i, 0)),
                  pl.BlockSpec((128, g), lambda i: (0, 0))],
        # (tile_r, g) output -> ~tile_r/8 masked stores per tile; this stays below the
        # tile's DMA/compute on all generations, so the fully lane-dense relayout
        # (v7x suggestion) is skipped: it would need an in-kernel gather.
        out_specs=pl.BlockSpec((tile_r, g), lambda i: (i, 0)),
        compiler_params=pltpu.CompilerParams(
            dimension_semantics=("parallel",),
            vmem_limit_bytes=_VMEM_LIMIT_BYTES),
        cost_estimate=pl.CostEstimate(
            flops=int(6 * rows * n),
            transcendentals=int(rows),
            bytes_accessed=int(rows * n * itemsize + rows * itemsize)),
    )(xp, s_mat)
    return out.reshape(rows, 1)


def std_layer(x, dim):
    """Pallas equivalent of StdLayer(dim).forward(x): unbiased std, keepdim=True."""
    ndim = x.ndim
    if dim < 0:
        dim += ndim
    if dim != ndim - 1:
        # TODO(synk): reduce over the sublane (second-to-last) axis in-kernel for
        # dim == ndim-2 instead of paying this full HBM moveaxis transpose.
        x = jnp.moveaxis(x, dim, -1)

    shape = x.shape
    n = shape[-1]
    rows = 1
    for s in shape[:-1]:
        rows *= s
    out_dtype = x.dtype

    if n == 1:
        # torch.std (unbiased) over a size-1 axis is 0/0 -> NaN.
        out = jnp.full(shape[:-1] + (1,), jnp.nan, dtype=out_dtype)
    else:
        x2d = x.reshape(rows, n)
        if n < 128 and 128 % n == 0 and rows % (128 // n) == 0:
            out2d = _std_packed(x2d, rows, n, out_dtype)
        else:
            # Also the fallback when rows % g != 0: route everything through the
            # lane path rather than paying a full-array pad copy.
            out2d = _std_lane(x2d, rows, n, out_dtype)
        out = out2d.reshape(shape[:-1] + (1,))

    if dim != ndim - 1:
        out = jnp.moveaxis(out, -1, dim)
    return out


if __name__ == "__main__":
    key = jax.random.PRNGKey(0)
    k1, k2, k3 = jax.random.split(key, 3)

    # EEG-like NCHW tensor: (batch=2, channels=4, electrodes=16, time=16) -> packed path.
    x = jax.random.normal(k1, (2, 4, 16, 16), dtype=jnp.float32)
    out = std_layer(x, dim=3)
    jax.block_until_ready(out)
    ref = jnp.std(x, axis=3, ddof=1, keepdims=True)
    assert out.shape == (2, 4, 16, 1), out.shape
    assert jnp.allclose(out, ref, atol=1e-5, rtol=1e-5)

    # General lane-reduction path: wide axis, non-zero mean, rows (120) not a
    # multiple of the tile (64) -> exercises the partial last block (no pad copy).
    x2 = jax.random.normal(k2, (2, 4, 15, 200), dtype=jnp.float32) * 3.0 + 1.5
    out2 = std_layer(x2, dim=-1)
    jax.block_until_ready(out2)
    ref2 = jnp.std(x2, axis=-1, ddof=1, keepdims=True)
    assert out2.shape == (2, 4, 15, 1), out2.shape
    assert jnp.allclose(out2, ref2, atol=1e-4, rtol=1e-4)

    # Packed path with a partial last block (prows=20, tile_r=16).
    x3 = jax.random.normal(k3, (2, 5, 16, 16), dtype=jnp.float32) + 0.5
    out3 = std_layer(x3, dim=-1)
    jax.block_until_ready(out3)
    ref3 = jnp.std(x3, axis=-1, ddof=1, keepdims=True)
    assert out3.shape == (2, 5, 16, 1), out3.shape
    assert jnp.allclose(out3, ref3, atol=1e-5, rtol=1e-5)

    print("KERNEL_OK")
</pallas_src>

<mosaic_0001>
module attributes {stable_mosaic.version = 11 : i64} {
  func.func @_std_packed_kernel(%arg0: i32, %arg1: memref<8x128xf32, #tpu.memory_space<vmem>>, %arg2: memref<128x8xf32, #tpu.memory_space<vmem>>, %arg3: memref<8x8xf32, #tpu.memory_space<vmem>>) attributes {dimension_semantics = [#tpu.dimension_semantics<parallel>], iteration_bounds = array<i64: 2>, scalar_prefetch = 0 : i64, scratch_operands = 0 : i64, tpu.core_type = #tpu.core_type<tc>, window_params = [{transform_indices = @transform_0, window_bounds = array<i64: 8, 128>}, {pipeline_mode = #tpu.pipeline_mode<synchronous>, transform_indices = @transform_1, window_bounds = array<i64: 128, 8>}, {transform_indices = @transform_2, window_bounds = array<i64: 8, 8>}]} {
    %c0 = arith.constant 0 : index
    %c0_0 = arith.constant 0 : index
    %0 = vector.load %arg1[%c0, %c0_0] : memref<8x128xf32, #tpu.memory_space<vmem>>, vector<8x128xf32>
    %1 = tpu.iota {dimensions = array<i32: 1>} : vector<1x128xi32>
    %c1_i32 = arith.constant 1 : i32
    %2 = tpu.dynamic_rotate %1 by %c1_i32 dim 1 : vector<1x128xi32>, i32 -> vector<1x128xi32>
    %c0_i32 = arith.constant 0 : i32
    %3 = vector.broadcast %c0_i32 : i32 to vector<1x128xi32>
    %4 = arith.cmpi eq, %1, %3 : vector<1x128xi32>
    %c1_i32_1 = arith.constant 1 : i32
    %5 = vector.broadcast %c1_i32_1 : i32 to vector<1x128xi32>
    %6 = arith.subi %1, %5 : vector<1x128xi32>
    %c127_i32 = arith.constant 127 : i32
    %7 = vector.broadcast %c127_i32 : i32 to vector<1x128xi32>
    %8 = arith.select %4, %7, %6 : vector<1x128xi1>, vector<1x128xi32>
    %9 = arith.cmpi eq, %2, %8 : vector<1x128xi32>
    %c127_i32_2 = arith.constant 127 : i32
    %10 = tpu.dynamic_rotate %0 by %c127_i32_2 dim 1 : vector<8x128xf32>, i32 -> vector<8x128xf32>
    %c1_i32_3 = arith.constant 1 : i32
    %11 = tpu.dynamic_rotate %0 by %c1_i32_3 dim 1 : vector<8x128xf32>, i32 -> vector<8x128xf32>
    %c1_i32_4 = arith.constant 1 : i32
    %12 = vector.broadcast %c1_i32_4 : i32 to vector<1x128xi32>
    %13 = arith.andi %1, %12 : vector<1x128xi32>
    %c0_i32_5 = arith.constant 0 : i32
    %14 = vector.broadcast %c0_i32_5 : i32 to vector<1x128xi32>
    %15 = arith.cmpi eq, %13, %14 : vector<1x128xi32>
    %16 = arith.xori %15, %9 : vector<1x128xi1>
    %cst = arith.constant dense<true> : vector<1x128xi1>
    %17 = arith.xori %16, %cst : vector<1x128xi1>
    %18 = vector.shape_cast %17 : vector<1x128xi1> to vector<1x128xi1>
    %19 = vector.broadcast %18 : vector<1x128xi1> to vector<8x128xi1>
    %20 = arith.select %19, %10, %11 : vector<8x128xi1>, vector<8x128xf32>
    %21 = arith.addf %0, %20 : vector<8x128xf32>
    %c126_i32 = arith.constant 126 : i32
    %22 = tpu.dynamic_rotate %21 by %c126_i32 dim 1 : vector<8x128xf32>, i32 -> vector<8x128xf32>
    %c2_i32 = arith.constant 2 : i32
    %23 = tpu.dynamic_rotate %21 by %c2_i32 dim 1 : vector<8x128xf32>, i32 -> vector<8x128xf32>
    %c2_i32_6 = arith.constant 2 : i32
    %24 = vector.broadcast %c2_i32_6 : i32 to vector<1x128xi32>
    %25 = arith.andi %1, %24 : vector<1x128xi32>
    %c0_i32_7 = arith.constant 0 : i32
    %26 = vector.broadcast %c0_i32_7 : i32 to vector<1x128xi32>
    %27 = arith.cmpi eq, %25, %26 : vector<1x128xi32>
    %28 = arith.xori %27, %9 : vector<1x128xi1>
    %cst_8 = arith.constant dense<true> : vector<1x128xi1>
    %29 = arith.xori %28, %cst_8 : vector<1x128xi1>
    %30 = vector.shape_cast %29 : vector<1x128xi1> to vector<1x128xi1>
    %31 = vector.broadcast %30 : vector<1x128xi1> to vector<8x128xi1>
    %32 = arith.select %31, %22, %23 : vector<8x128xi1>, vector<8x128xf32>
    %33 = arith.addf %21, %32 : vector<8x128xf32>
    %c124_i32 = arith.constant 124 : i32
    %34 = tpu.dynamic_rotate %33 by %c124_i32 dim 1 : vector<8x128xf32>, i32 -> vector<8x128xf32>
    %c4_i32 = arith.constant 4 : i32
    %35 = tpu.dynamic_rotate %33 by %c4_i32 dim 1 : vector<8x128xf32>, i32 -> vector<8x128xf32>
    %c4_i32_9 = arith.constant 4 : i32
    %36 = vector.broadcast %c4_i32_9 : i32 to vector<1x128xi32>
    %37 = arith.andi %1, %36 : vector<1x128xi32>
    %c0_i32_10 = arith.constant 0 : i32
    %38 = vector.broadcast %c0_i32_10 : i32 to vector<1x128xi32>
    %39 = arith.cmpi eq, %37, %38 : vector<1x128xi32>
    %40 = arith.xori %39, %9 : vector<1x128xi1>
    %cst_11 = arith.constant dense<true> : vector<1x128xi1>
    %41 = arith.xori %40, %cst_11 : vector<1x128xi1>
    %42 = vector.shape_cast %41 : vector<1x128xi1> to vector<1x128xi1>
    %43 = vector.broadcast %42 : vector<1x128xi1> to vector<8x128xi1>
    %44 = arith.select %43, %34, %35 : vector<8x128xi1>, vector<8x128xf32>
    %45 = arith.addf %33, %44 : vector<8x128xf32>
    %c120_i32 = arith.constant 120 : i32
    %46 = tpu.dynamic_rotate %45 by %c120_i32 dim 1 : vector<8x128xf32>, i32 -> vector<8x128xf32>
    %c8_i32 = arith.constant 8 : i32
    %47 = tpu.dynamic_rotate %45 by %c8_i32 dim 1 : vector<8x128xf32>, i32 -> vector<8x128xf32>
    %c8_i32_12 = arith.constant 8 : i32
    %48 = vector.broadcast %c8_i32_12 : i32 to vector<1x128xi32>
    %49 = arith.andi %1, %48 : vector<1x128xi32>
    %c0_i32_13 = arith.constant 0 : i32
    %50 = vector.broadcast %c0_i32_13 : i32 to vector<1x128xi32>
    %51 = arith.cmpi eq, %49, %50 : vector<1x128xi32>
    %52 = arith.xori %51, %9 : vector<1x128xi1>
    %cst_14 = arith.constant dense<true> : vector<1x128xi1>
    %53 = arith.xori %52, %cst_14 : vector<1x128xi1>
    %54 = vector.shape_cast %53 : vector<1x128xi1> to vector<1x128xi1>
    %55 = vector.broadcast %54 : vector<1x128xi1> to vector<8x128xi1>
    %56 = arith.select %55, %46, %47 : vector<8x128xi1>, vector<8x128xf32>
    %57 = arith.addf %45, %56 : vector<8x128xf32>
    %cst_15 = arith.constant 6.250000e-02 : f32
    %58 = vector.broadcast %cst_15 : f32 to vector<8x128xf32>
    %59 = arith.mulf %57, %58 : vector<8x128xf32>
    %60 = arith.subf %0, %59 : vector<8x128xf32>
    %61 = arith.mulf %60, %60 : vector<8x128xf32>
    %c0_16 = arith.constant 0 : index
    %c0_17 = arith.constant 0 : index
    %62 = vector.load %arg2[%c0_16, %c0_17] : memref<128x8xf32, #tpu.memory_space<vmem>>, vector<128x8xf32>
    %cst_18 = arith.constant dense<0.000000e+00> : vector<8x8xf32>
    %63 = tpu.matmul %61, %62, %cst_18 {dimension_numbers = #tpu.dot_dimension_numbers<[1], [0], [0], [1], [0, 0, 1, 1], [], []>, precision = #tpu.contract_precision<fp32>} : vector<8x128xf32>, vector<128x8xf32>, vector<8x8xf32> -> vector<8x8xf32>
    %cst_19 = arith.constant 0.0666666701 : f32
    %64 = vector.broadcast %cst_19 : f32 to vector<8x8xf32>
    %65 = arith.mulf %63, %64 : vector<8x8xf32>
    %66 = math.sqrt %65 : vector<8x8xf32>
    %c0_20 = arith.constant 0 : index
    %c0_21 = arith.constant 0 : index
    %67 = vector.load %arg3[%c0_20, %c0_21] : memref<8x8xf32, #tpu.memory_space<vmem>>, vector<8x8xf32>
    tpu.vector_store %arg3[%c0_20, %c0_21], %66 {strides = array<i32>} : memref<8x8xf32, #tpu.memory_space<vmem>>, vector<8x8xf32>,
    return
  }
  func.func @transform_0(%arg0: i32) -> (i32, i32) {
    %c0_i32 = arith.constant 0 : i32
    %c0_i32_0 = arith.constant 0 : i32
    return %arg0, %c0_i32 : i32, i32
  }
  func.func @transform_1(%arg0: i32) -> (i32, i32) {
    %c0_i32 = arith.constant 0 : i32
    %c0_i32_0 = arith.constant 0 : i32
    %c0_i32_1 = arith.constant 0 : i32
    return %c0_i32, %c0_i32_0 : i32, i32
  }
  func.func @transform_2(%arg0: i32) -> (i32, i32) {
    %c0_i32 = arith.constant 0 : i32
    %c0_i32_0 = arith.constant 0 : i32
    return %arg0, %c0_i32 : i32, i32
  }
}

</mosaic_0001>

<bundles_post_ra>
// kernel: tpu_custom_call.1
= control target key start
LH: loop header
LB: loop body
LE: loop exit
PB: predicated region body
PF: predicated region fallthrough
CT: control target
= control target key end

     0   :  { %s691_s9 = smov 0   ;;  %s999_s0 = inlined_call_operand.vmem [shape: f32[16,128], index: 0, kind: input, shape index: {}]   ;;  %s1000_s1 = inlined_call_operand.vmem [shape: f32[128,8], index: 1, kind: input, shape index: {}]   ;;  %s1001_s2 = inlined_call_operand.vmem [shape: f32[16,8], index: 2, kind: output, shape index: {}]  }
   0x1 LB: > { %s628_s10 = sadd.s32 4294967295, %s664_s9   ;;  %p632_p0 = scmp.ge.s32.totalorder %s664_s9, 1  ;;  %s664_s9 = sphi %s691_s9, %s12_s9  }
   0x2   : > { %p111_p1 = scmp.lt.s32.totalorder %s664_s9, 3 }
   0x4   : > { %p112_p2 = pnand %p632_p0, %p111_p1 }
   0x5   : > { %p131_p3 = scmp.lt.s32.totalorder (!%p112_p2), %s628_s10, 1  ;;  %s666_s11 = smov (!%p112_p2), 1  }
   0x6   : > { %115 = sbr.rel (%p112_p2) target bundleno = 673 (0x2a1), region = 28  ;;  %s667_s16 = smov (!%p112_p2), 127  }
   0x7   : > { %s670_s17 = smov (!%p112_p2), 2   ;;  %s671_s18 = smov (!%p112_p2), 126  }
   0x8   : > { %s672_s19 = smov (!%p112_p2), 4   ;;  %s673_s20 = smov (!%p112_p2), 124  }
   0xb   : > { %v140_v0 = vlaneseq  ;;  %s1003_s10 = smov (!%p131_p3, %s628_s10), 1  ;;  %vm668_vm5 = vmmov 1   ;;  %v669_v10 = vmov 0   ;;  %v218_v25 = vld [vmem:[%s1000_s1 + $0x78] sm:$0xff]  ;;  %v217_v26 = vld [vmem:[%s1000_s1 + $0x70] sm:$0xff]  ;;  %v216_v27 = vld [vmem:[%s1000_s1 + $0x68] sm:$0xff] }
   0xc   : > { %s633_s12 = sshll.u32 %s1003_s10, 3  ;;  %v737_v28 = vand.u32 4294901760, %v218_v25  ;;  %v739_v29 = vand.u32 4294901760, %v217_v26  ;;  %v741_v30 = vand.u32 4294901760, %v216_v27  ;;  %v215_v31 = vld [vmem:[%s1000_s1 + $0x60] sm:$0xff]  ;;  %v214_v32 = vld [vmem:[%s1000_s1 + $0x58] sm:$0xff] }
   0xd   : > { %v141_v1 = vand.u32 127, %v140_v0  ;;  %s134_s15 = scalar_lea.vmem %s999_s0, %s633_s12  ;;  %v213_v33 = vld [vmem:[%s1000_s1 + $0x50] sm:$0xff]  ;;  %v752_v34 = vand.u32 4294901760, %v215_v31  ;;  %v754_v35 = vand.u32 4294901760, %v214_v32  ;;  %v212_v37 = vld [vmem:[%s1000_s1 + $0x48] sm:$0xff]  ;;  %v211_v38 = vld [vmem:[%s1000_s1 + $0x40] sm:$0xff]  ;;  %s138_s4 = scalar_lea.vmem %s1001_s2, %s633_s12 }
   0xe   : > { %v707_v2 = vld [vmem:[%s134_s15] sm:$0xff]  ;;  %v756_v36 = vand.u32 4294901760, %v213_v33  ;;  %v765_v39 = vsub.f32 %v218_v25, %v737_v28  ;;  %v768_v40 = vsub.f32 %v217_v26, %v739_v29  ;;  %v771_v41 = vsub.f32 %v216_v27, %v741_v30  ;;  %220 = vmatpush.msra.mxu0 %v737_v28  ;;  %416 = vmatpush.msra.mxu3 %v737_v28  ;;  %v210_v57 = vld [vmem:[%s1000_s1 + $0x38] sm:$0xff]  ;;  %v209_v58 = vld [vmem:[%s1000_s1 + $0x30] sm:$0xff] }
   0xf   : > { %142 = vrot.lane.b32.xlu0 %v141_v1, %s666_s11  ;;  %150 = vrot.lane.b32.xlu1 %v707_v2, %s666_s11  ;;  %v635_v3 = vadd.s32 4294967295, %v141_v1  ;;  %vm144_vm0 = vcmp.eq.s32.totalorder %v141_v1, 0  ;;  %v152_v4 = vand.u32 1, %v141_v1  ;;  %v165_v5 = vand.u32 2, %v141_v1 }
  0x10   : > { %v178_v7 = vand.u32 4, %v141_v1  ;;  %v191_v9 = vand.u32 8, %v141_v1  ;;  %v774_v42 = vand.u32 4294901760, %v212_v37  ;;  %v778_v43 = vsub.f32 %v215_v31, %v752_v34  ;;  %222 = vmatpush.msra.mxu0 %v739_v29  ;;  %363 = vmatpush.msra.mxu2 %v765_v39 }
  0x11   : > { %v146_v6 = vsel %vm144_vm0, 127, %v635_v3  ;;  %vm153_vm1 = vcmp.eq.s32.totalorder %v152_v4, 0  ;;  %vm166_vm3 = vcmp.eq.s32.totalorder %v165_v5, 0  ;;  %v781_v44 = vsub.f32 %v214_v32, %v754_v35  ;;  %418 = vmatpush.msra.mxu3 %v739_v29 }
  0x12   : > { %vm179_vm7 = vcmp.eq.s32.totalorder %v178_v7, 0  ;;  %vm192_vm10 = vcmp.eq.s32.totalorder %v191_v9, 0  ;;  %v784_v45 = vsub.f32 %v213_v33, %v756_v36  ;;  %v262_v46 = vand.u32 4294901760, %v765_v39  ;;  %224 = vmatpush.msra.mxu0 %v741_v30  ;;  %366 = vmatpush.msra.mxu2 %v768_v40 }
  0x13   : > { %v268_v47 = vand.u32 4294901760, %v768_v40  ;;  %v274_v48 = vand.u32 4294901760, %v771_v41  ;;  %v790_v49 = vand.u32 4294901760, %v211_v38  ;;  %v280_v50 = vand.u32 4294901760, %v778_v43  ;;  %420 = vmatpush.msra.mxu3 %v741_v30 }
  0x14   : > { %v795_v51 = vsub.f32 %v212_v37, %v774_v42  ;;  %v263_v52 = vsub.f32 %v765_v39, %v262_v46  ;;  %v286_v55 = vand.u32 4294901760, %v781_v44  ;;  %v292_v56 = vand.u32 4294901760, %v784_v45  ;;  %226 = vmatpush.msra.mxu0 %v752_v34  ;;  %369 = vmatpush.msra.mxu2 %v771_v41  ;;  %v207_v37 = vld [vmem:[%s1000_s1 + $0x20] sm:$0xff] }
  0x15   : > { %v269_v53 = vsub.f32 %v768_v40, %v268_v47  ;;  %v275_v54 = vsub.f32 %v771_v41, %v274_v48  ;;  %v281_v61 = vsub.f32 %v778_v43, %v280_v50  ;;  %v823_v62 = vsub.f32 %v211_v38, %v790_v49  ;;  %422 = vmatpush.msra.mxu3 %v752_v34 }
  0x16   : > { %v264_v59 = vand.u32 4294901760, %v263_v52  ;;  %v298_v63 = vand.u32 4294901760, %v795_v51  ;;  %v287_v1 = vsub.f32 %v781_v44, %v286_v55  ;;  %228 = vmatpush.msra.mxu0 %v754_v35  ;;  %v832_v3 = vand.u32 4294901760, %v210_v57  ;;  %372 = vmatpush.msra.mxu2 %v778_v43  ;;  %v206_v52 = vld [vmem:[%s1000_s1 + $0x18] sm:$0xff] }
  0x17   : > { %148 = vrot.lane.b32.xlu0 %v707_v2, %s667_s16  ;;  %v270_v60 = vand.u32 4294901760, %v269_v53  ;;  %v276_v0 = vand.u32 4294901760, %v275_v54  ;;  %v834_v4 = vand.u32 4294901760, %v209_v58  ;;  %v293_v5 = vsub.f32 %v784_v45, %v292_v56  ;;  %424 = vmatpush.msra.mxu3 %v754_v35  ;;  %s674_s16 = smov 8   ;;  %v205_v53 = vld [vmem:[%s1000_s1 + $0x10] sm:$0xff]  ;;  %v204_v54 = vld [vmem:[%s1000_s1 + $0x8] sm:$0xff] }
  0x18   : > { %265 = vmatpush.msra.mxu1 %v264_v59  ;;  %v304_v7 = vand.u32 4294901760, %v823_v62  ;;  %230 = vmatpush.msra.mxu0 %v756_v36  ;;  %v912_v59 = vand.u32 4294901760, %v204_v54 }
  0x19   : > { %v847_v9 = vsub.f32 %v209_v58, %v834_v4  ;;  %375 = vmatpush.msra.mxu2 %v781_v44  ;;  %426 = vmatpush.msra.mxu3 %v756_v36  ;;  %v910_v58 = vand.u32 4294901760, %v205_v53 }
  0x1a   : > { %271 = vmatpush.msra.mxu1 %v270_v60  ;;  %232 = vmatpush.msra.mxu0 %v774_v42  ;;  %v203_v60 = vld [vmem:[%s1000_s1] sm:$0xff] }
  0x1b   : > { %378 = vmatpush.msra.mxu2 %v784_v45  ;;  %428 = vmatpush.msra.mxu3 %v774_v42 }
  0x1c   : > { %277 = vmatpush.msra.mxu1 %v276_v0  ;;  %234 = vmatpush.msra.mxu0 %v790_v49 }
  0x1d   : > { %381 = vmatpush.msra.mxu2 %v795_v51  ;;  %430 = vmatpush.msra.mxu3 %v790_v49 }
  0x1e   : > { %236 = vmatpush.msra.mxu0 %v832_v3 }
  0x1f   : > { %384 = vmatpush.msra.mxu2 %v823_v62  ;;  %432 = vmatpush.msra.mxu3 %v832_v3 }
  0x20   : > { %238 = vmatpush.msra.mxu0 %v834_v4 }
  0x21   : > { %434 = vmatpush.msra.mxu3 %v834_v4 }
  0x81   : > { %v143_v8 = vpop.permute.xlu0 %142  ;;  %v151_v13 = vpop.permute.xlu1 %150 }
  0x82   : > { %vm147_vm2 = vcmp.eq.s32.totalorder %v143_v8, %v146_v6  ;;  %v282_v6 = vand.u32 4294901760, %v281_v61  ;;  %v843_v8 = vsub.f32 %v210_v57, %v832_v3  ;;  %v908_v57 = vand.u32 4294901760, %v206_v52 }
  0x83   : > { %vm154_vm4 = vmxor %vm153_vm1, %vm147_vm2 }
  0x84   : > { %vm155_vm6 = vmxor %vm154_vm4, %vm668_vm5  ;;  %283 = vmatpush.msra.mxu1 %v282_v6  ;;  %387 = vmatpush.msra.mxu2 %v843_v8  ;;  %v927_v6 = vsub.f32 %v205_v53, %v910_v58  ;;  %vm573_vm4 = vcmask 64512  }
  0x85   : > { %vm167_vm8 = vmxor %vm166_vm3, %vm147_vm2  ;;  %v156_v11 = vsel %vm155_vm6, 1, %v669_v10 }
  0x86   : > { %vm168_vm9 = vmxor %vm167_vm8, %vm668_vm5  ;;  %v157_v12 = vperm.slane %v156_v11, 0  ;;  %v299_v11 = vsub.f32 %v795_v51, %v298_v63  ;;  %390 = vmatpush.msra.mxu2 %v847_v9 }
  0x87   : > { %vm180_vm11 = vmxor %vm179_vm7, %vm147_vm2  ;;  %v169_v14 = vsel %vm168_vm9, 1, %v669_v10 }
  0x88   : > { %vm181_vm12 = vmxor %vm180_vm11, %vm668_vm5  ;;  %vm158_vm13 = vcmp.eq.s32.totalorder %v157_v12, 1  ;;  %v170_v20 = vperm.slane %v169_v14, 0  ;;  %v310_v12 = vand.u32 4294901760, %v843_v8  ;;  %v305_v14 = vsub.f32 %v823_v62, %v304_v7 }
  0x89   : > { %vm193_vm14 = vmxor %vm192_vm10, %vm147_vm2  ;;  %v149_v15 = vpop.permute.xlu0 %148  ;;  %v718_v16 = vsel %vm181_vm12, 1, %v669_v10 }
  0x8a   : > { %vm194_vm15 = vmxor %vm193_vm14, %vm668_vm5  ;;  %v159_v17 = vsel %vm158_vm13, %v149_v15, %v151_v13  ;;  %vm171_vm0 = vcmp.eq.s32.totalorder %v170_v20, 1  ;;  %v294_v13 = vand.u32 4294901760, %v293_v5  ;;  %v316_v15 = vand.u32 4294901760, %v847_v9 }
  0x8b   : > { %v160_v18 = vadd.f32 %v159_v17, %v707_v2  ;;  %v722_v19 = vsel %vm194_vm15, 1, %v669_v10  ;;  %v288_v10 = vand.u32 4294901760, %v287_v1  ;;  %v300_v17 = vand.u32 4294901760, %v299_v11 }
  0x8c   : > { %v306_v20 = vand.u32 4294901760, %v305_v14  ;;  %v922_v1 = vand.u32 4294901760, %v203_v60  ;;  %v333_v5 = vsub.f32 %v206_v52, %v908_v57 }
  0x8d   : > { %163 = vrot.lane.b32.xlu2 %v160_v18, %s670_s17  ;;  %161 = vrot.lane.b32.xlu1 %v160_v18, %s671_s18  ;;  %s675_s17 = smov 120  }
  0x8e   : > { %289 = vmatpush.msra.mxu1 %v288_v10  ;;  %v930_v10 = vsub.f32 %v204_v54, %v912_v59  ;;  %v351_v14 = vsub.f32 %v203_v60, %v922_v1 }
  0x90   : > { %295 = vmatpush.msra.mxu1 %v294_v13 }
  0x92   : > { %301 = vmatpush.msra.mxu1 %v300_v17  ;;  %v334_v17 = vand.u32 4294901760, %v333_v5 }
  0x94   : > { %307 = vmatpush.msra.mxu1 %v306_v20  ;;  %v346_v20 = vand.u32 4294901760, %v930_v10 }
  0xe7   : > { %v164_v21 = vpop.permute.xlu2 %163 }
  0xff   : > { %v162_v22 = vpop.permute.xlu1 %161 }
 0x100   : > { %v172_v23 = vsel %vm171_vm0, %v162_v22, %v164_v21  ;;  %v317_v21 = vsub.f32 %v847_v9, %v316_v15 }
 0x101   : > { %v724_v24 = vadd.f32 %v172_v23, %v160_v18  ;;  %v311_v18 = vsub.f32 %v843_v8, %v310_v12  ;;  %v183_v23 = vperm.slane %v718_v16, 0  ;;  %v208_v16 = vld [vmem:[%s1000_s1 + $0x28] sm:$0xff] }
 0x102   : > { %v318_v25 = vand.u32 4294901760, %v317_v21  ;;  %v887_v33 = vand.u32 4294901760, %v208_v16 }
 0x103   : > { %176 = vrot.lane.b32.xlu0 %v724_v24, %s672_s19  ;;  %174 = vrot.lane.b32.xlu2 %v724_v24, %s673_s20  ;;  %v312_v22 = vand.u32 4294901760, %v311_v18  ;;  %vm184_vm1 = vcmp.eq.s32.totalorder %v183_v23, 1  ;;  %v340_v18 = vand.u32 4294901760, %v927_v6  ;;  %v352_v23 = vand.u32 4294901760, %v351_v14 }
 0x104   : > { %v893_v38 = vsub.f32 %v208_v16, %v887_v33  ;;  %240 = vmatpush.msra.mxu0 %v887_v33  ;;  %436 = vmatpush.msra.mxu3 %v887_v33 }
 0x105   : > { %313 = vmatpush.msra.mxu1 %v312_v22 }
 0x106   : > { %v322_v61 = vand.u32 4294901760, %v893_v38  ;;  %393 = vmatpush.msra.mxu2 %v893_v38 }
 0x107   : > { %319 = vmatpush.msra.mxu1 %v318_v25  ;;  %v335_v25 = vsub.f32 %v333_v5, %v334_v17 }
 0x108   : > { %v323_v11 = vsub.f32 %v893_v38, %v322_v61  ;;  %v353_v38 = vsub.f32 %v351_v14, %v352_v23 }
 0x109   : > { %v336_v16 = vand.u32 4294901760, %v335_v25 }
 0x10a   : > { %v324_v21 = vand.u32 4294901760, %v323_v11  ;;  %v354_v53 = vand.u32 4294901760, %v353_v38 }
 0x10c   : > { %325 = vmatpush.msra.mxu1 %v324_v21 }
 0x15d   : > { %v175_v26 = vpop.permute.xlu2 %174 }
 0x175   : > { %v177_v27 = vpop.permute.xlu0 %176 }
 0x176   : > { %v185_v31 = vsel %vm184_vm1, %v175_v26, %v177_v27  ;;  %v341_v26 = vsub.f32 %v927_v6, %v340_v18 }
 0x177   : > { %v880_v32 = vadd.f32 %v185_v31, %v724_v24  ;;  %v895_v24 = vand.u32 4294901760, %v207_v37  ;;  %v347_v31 = vsub.f32 %v930_v10, %v346_v20 }
 0x179   : > { %189 = vrot.lane.b32.xlu2 %v880_v32, %s674_s16  ;;  %187 = vrot.lane.b32.xlu1 %v880_v32, %s675_s17  ;;  %v919_v0 = vsub.f32 %v207_v37, %v895_v24  ;;  %v342_v37 = vand.u32 4294901760, %v341_v26  ;;  %v348_v52 = vand.u32 4294901760, %v347_v31 }
 0x17a   : > { %242 = vmatpush.msra.mxu0 %v895_v24  ;;  %438 = vmatpush.msra.mxu3 %v895_v24 }
 0x17b   : > { %v328_v13 = vand.u32 4294901760, %v919_v0  ;;  %396 = vmatpush.msra.mxu2 %v919_v0 }
 0x17c   : > { %244 = vmatpush.msra.mxu0 %v908_v57  ;;  %440 = vmatpush.msra.mxu3 %v908_v57 }
 0x17d   : > { %v329_v22 = vsub.f32 %v919_v0, %v328_v13  ;;  %399 = vmatpush.msra.mxu2 %v333_v5 }
 0x17e   : > { %246 = vmatpush.msra.mxu0 %v910_v58  ;;  %442 = vmatpush.msra.mxu3 %v910_v58 }
 0x17f   : > { %v330_v27 = vand.u32 4294901760, %v329_v22  ;;  %402 = vmatpush.msra.mxu2 %v927_v6 }
 0x180   : > { %248 = vmatpush.msra.mxu0 %v912_v59  ;;  %444 = vmatpush.msra.mxu3 %v912_v59 }
 0x181   : > { %331 = vmatpush.msra.mxu1 %v330_v27  ;;  %405 = vmatpush.msra.mxu2 %v930_v10 }
 0x182   : > { %250 = vmatpush.msra.mxu0 %v922_v1  ;;  %446 = vmatpush.msra.mxu3 %v922_v1 }
 0x183   : > { %337 = vmatpush.msra.mxu1 %v336_v16  ;;  %408 = vmatpush.msra.mxu2 %v351_v14 }
 0x184   : > { %457 = vmatpush.msrb.mxu0 %v262_v46 }
 0x185   : > { %343 = vmatpush.msra.mxu1 %v342_v37 }
 0x186   : > { %461 = vmatpush.msrb.mxu0 %v268_v47 }
 0x187   : > { %349 = vmatpush.msra.mxu1 %v348_v52 }
 0x188   : > { %465 = vmatpush.msrb.mxu0 %v274_v48 }
 0x189   : > { %355 = vmatpush.msra.mxu1 %v354_v53 }
 0x18a   : > { %469 = vmatpush.msrb.mxu0 %v280_v50 }
 0x18b   : > { %524 = vmatpush.msrb.mxu1 %v737_v28  ;;  %v196_v28 = vperm.slane %v722_v19, 0 }
 0x18c   : > { %473 = vmatpush.msrb.mxu0 %v286_v55 }
 0x18d   : > { %526 = vmatpush.msrb.mxu1 %v739_v29  ;;  %vm197_vm2 = vcmp.eq.s32.totalorder %v196_v28, 1 }
 0x18e   : > { %477 = vmatpush.msrb.mxu0 %v292_v56 }
 0x18f   : > { %528 = vmatpush.msrb.mxu1 %v741_v30 }
 0x190   : > { %481 = vmatpush.msrb.mxu0 %v298_v63 }
 0x191   : > { %530 = vmatpush.msrb.mxu1 %v752_v34 }
 0x192   : > { %485 = vmatpush.msrb.mxu0 %v304_v7 }
 0x193   : > { %532 = vmatpush.msrb.mxu1 %v754_v35 }
 0x194   : > { %489 = vmatpush.msrb.mxu0 %v310_v12 }
 0x195   : > { %534 = vmatpush.msrb.mxu1 %v756_v36 }
 0x196   : > { %493 = vmatpush.msrb.mxu0 %v316_v15 }
 0x197   : > { %536 = vmatpush.msrb.mxu1 %v774_v42 }
 0x198   : > { %497 = vmatpush.msrb.mxu0 %v322_v61 }
 0x199   : > { %538 = vmatpush.msrb.mxu1 %v790_v49 }
 0x19a   : > { %501 = vmatpush.msrb.mxu0 %v328_v13 }
 0x19b   : > { %540 = vmatpush.msrb.mxu1 %v832_v3 }
 0x19c   : > { %505 = vmatpush.msrb.mxu0 %v334_v17 }
 0x19d   : > { %542 = vmatpush.msrb.mxu1 %v834_v4 }
 0x19e   : > { %509 = vmatpush.msrb.mxu0 %v340_v18 }
 0x19f   : > { %544 = vmatpush.msrb.mxu1 %v887_v33 }
 0x1a0   : > { %513 = vmatpush.msrb.mxu0 %v346_v20 }
 0x1a1   : > { %546 = vmatpush.msrb.mxu1 %v895_v24 }
 0x1a2   : > { %517 = vmatpush.msrb.mxu0 %v352_v23 }
 0x1a3   : > { %548 = vmatpush.msrb.mxu1 %v908_v57 }
 0x1a5   : > { %550 = vmatpush.msrb.mxu1 %v910_v58 }
 0x1a7   : > { %552 = vmatpush.msrb.mxu1 %v912_v59 }
 0x1a9   : > { %554 = vmatpush.msrb.mxu1 %v922_v1 }
 0x1d3   : > { %v190_v29 = vpop.permute.xlu2 %189 }
 0x1eb   : > { %v188_v30 = vpop.permute.xlu1 %187 }
 0x1ec   : > { %v198_v34 = vsel %vm197_vm2, %v188_v30, %v190_v29 }
 0x1ed   : > { %v199_v35 = vadd.f32 %v198_v34, %v880_v32 }
 0x1ef   : > { %v200_v36 = vmul.f32 0.0625, %v199_v35 }
 0x1f1   : > { %v201_v39 = vsub.f32 %v707_v2, %v200_v36 }
 0x1f3   : > { %v202_v40 = vmul.f32 %v201_v39, %v201_v39 }
 0x1f5   : > { %v251_v41 = vand.u32 4294901760, %v202_v40 }
 0x1f7   : > { %357 = vmatmul.f32.vlgmr.msra.gmra.mxu1 %v251_v41  ;;  %v252_v42 = vsub.f32 %v202_v40, %v251_v41 }
 0x1f9   : > { %411 = vmatmul.f32.vlgmr.msra.gmra.mxu2 %v252_v42  ;;  %v253_v43 = vand.u32 4294901760, %v252_v42 }
 0x1fb   : > { %450 = vmatmul.f32.vlgmr.msra.gmra.mxu3 %v253_v43  ;;  %v254_v44 = vsub.f32 %v252_v42, %v253_v43 }
 0x1fd   : > { %v255_v45 = vand.u32 4294901760, %v254_v44 }
 0x1ff   : > { %256 = vmatmul.f32.vlgmr.msra.gmra.mxu0 %v255_v45  ;;  %556 = vmatmul.f32.vlgmr.msrb.gmra.mxu1 %v251_v41 }
 0x207   : > { %519 = vmatmul.f32.vlgmr.msrb.gmra.mxu0 %v251_v41 }
 0x274   : > { %v358_v19 = vpop.f32.mrf.mxu1 }
 0x27c   : > { %v257_v46 = vpop.f32.mrf.mxu0  ;;  %v412_v48 = vpop.f32.mrf.mxu2 }
 0x27d   : > { %v359_v47 = vadd.f32 %v358_v19, %v257_v46  ;;  %v557_v56 = vpop.f32.mrf.mxu1 }
 0x27e   : > { %v451_v50 = vpop.f32.mrf.mxu3 }
 0x27f   : > { %v413_v49 = vadd.f32 %v412_v48, %v359_v47 }
 0x281   : > { %v452_v2 = vadd.f32 %v451_v50, %v413_v49 }
 0x284   : > { %v520_v51 = vpop.f32.mrf.mxu0 }
 0x285   : > { %v521_v55 = vadd.f32 %v520_v51, %v452_v2 }
 0x287   : > { %v558_v62 = vadd.f32 %v557_v56, %v521_v55 }
 0x289   : > { %v560_v63 = vmul.f32 0.06666667, %v558_v62 }
 0x28b   : > { %656 = vrsqrt.f32 %v560_v63  ;;  %vm568_vm3 = vcmp.eq.f32.partialorder %v560_v63, inf  ;;  %v571_v32 = vand.u32 2147483648, %v560_v63  ;;  %vm570_vm5 = vcmp.eq.f32.partialorder %v560_v63, 0.0 }
 0x291   : > { %v657_v3 = vpop.eup %656 }
 0x292   : > { %v562_v4 = vmul.f32 %v657_v3, %v560_v63 }
 0x294   : > { %v563_v7 = vmul.f32 %v657_v3, %v562_v4 }
 0x296   : > { %v564_v8 = vmul.f32 0.5, %v563_v7 }
 0x298   : > { %v565_v9 = vsub.f32 1.5, %v564_v8 }
 0x29a   : > { %v566_v12 = vmul.f32 %v657_v3, %v565_v9 }
 0x29c   : > { %v567_v15 = vmul.f32 %v566_v12, %v560_v63 }
 0x29e   : > { %v569_v33 = vsel %vm568_vm3, %v560_v63, %v567_v15 }
 0x29f   : > { %v572_v24 = vsel %vm570_vm5, %v571_v32, %v569_v33 }
 0x2a0   : > { %574 = vst.msk [vmem:[%s138_s4] sm:$0xff] %vm573_vm4, %v572_v24 }
 0x2a1 PF: > { %s12_s9 = sadd.s32 1, %s664_s9  }
 0x2a2   : > { %p9_p4 = scmp.ge.s32.totalorder %s12_s9, 4  }
 0x2a4   :  { %11 = sbr.rel (!%p9_p4) target bundleno = 1 (0x1), region = 58 }

</bundles_post_ra>
